<compile_context>
chip_gen: v6e
topology: v6e:2x2x1
jax: 0.10.0
libtpu: 0.0.40
codegen_flags: <defaults>
</compile_context>

<pallas_src>
import functools

import jax
import jax.numpy as jnp
import numpy as np
from jax.experimental import pallas as pl
from jax.experimental.pallas import tpu as pltpu


# ---------------------------------------------------------------------------
# Pallas kernel: bidirectional LSTM recurrence over one (batch tile, seq chunk)
# ---------------------------------------------------------------------------
def _bilstm_kernel(gxf_ref, gxb_ref, whh_ref, hf_ref, hb_ref, state_ref,
                   *, hidden_size, chunk_len):
    """gxf_ref / gxb_ref : (chunk, bb, 4H) bf16  precomputed x@W_ih^T + bias, gates [i,f,o,g]
       whh_ref           : (2H, 8H)        bf16  block-diag [W_hh_f^T | W_hh_b^T]
       hf_ref / hb_ref   : (chunk, bb, H)  bf16  per-timestep hidden states (fwd / bwd)
       state_ref         : (4, bb, H)      f32   [h_f, c_f, h_b, c_b] carried across chunks
    """
    H = hidden_size

    # Reset the recurrent state at the first sequence chunk of each batch tile.
    @pl.when(pl.program_id(1) == 0)
    def _init():
        state_ref[...] = jnp.zeros_like(state_ref)

    def body(s, carry):
        h_f, c_f, h_b, c_b = carry
        t_b = chunk_len - 1 - s                       # reverse-direction local index

        # One fused MXU matmul per step: (bb, 2H) x (2H, 8H) block-diagonal weight.
        h_cat = jnp.concatenate([h_f, h_b], axis=-1).astype(jnp.bfloat16)
        gboth = jnp.dot(h_cat, whh_ref[...], preferred_element_type=jnp.float32)

        gates_f = gxf_ref[s].astype(jnp.float32) + gboth[:, :4 * H]
        gates_b = gxb_ref[t_b].astype(jnp.float32) + gboth[:, 4 * H:]

        def lstm_gates(gates, c_prev):
            sig = jax.nn.sigmoid(gates[:, :3 * H])    # [i | f | o] in one EUP block
            g = jnp.tanh(gates[:, 3 * H:])            # cell candidate
            c_new = sig[:, H:2 * H] * c_prev + sig[:, :H] * g
            h_new = sig[:, 2 * H:] * jnp.tanh(c_new)
            return h_new, c_new

        h_f, c_f = lstm_gates(gates_f, c_f)
        h_b, c_b = lstm_gates(gates_b, c_b)

        hf_ref[s] = h_f.astype(hf_ref.dtype)
        hb_ref[t_b] = h_b.astype(hb_ref.dtype)
        return (h_f, c_f, h_b, c_b)

    carry0 = (state_ref[0], state_ref[1], state_ref[2], state_ref[3])
    h_f, c_f, h_b, c_b = jax.lax.fori_loop(
        0, chunk_len, body, carry0, unroll=min(chunk_len, 8))

    state_ref[0] = h_f
    state_ref[1] = c_f
    state_ref[2] = h_b
    state_ref[3] = c_b


# ---------------------------------------------------------------------------
# Wrapper helpers
# ---------------------------------------------------------------------------
def _reorder_ifog(w):
    """PyTorch LSTM gate order [i, f, g, o] -> [i, f, o, g] along axis 0."""
    i, f, g, o = jnp.split(w, 4, axis=0)
    return jnp.concatenate([i, f, o, g], axis=0)


def _pick_batch_tile(b_pad):
    """Multiple of 8 dividing b_pad, <= 128; prefer >= 2 grid steps (v7x megacore)."""
    cands = [d for d in range(8, min(b_pad, 128) + 1, 8) if b_pad % d == 0]
    half = [d for d in cands if d <= max(b_pad // 2, 8)]
    return max(half) if half else max(cands)


def _pick_seq_chunk(seq_len, bb, hidden, budget_bytes=8 << 20):
    """Largest divisor of S whose double-buffered bf16 gx block fits the budget."""
    best = 1
    for c in range(1, seq_len + 1):
        if seq_len % c == 0 and 2 * c * bb * 4 * hidden * 2 <= budget_bytes:
            best = c
    return best


def _vmem_limit_bytes(chunk, bb, hidden):
    gx_blk = chunk * bb * 4 * hidden * 2              # bf16, per direction
    hs_blk = chunk * bb * hidden * 2
    w_blk = (2 * hidden) * (8 * hidden) * 2
    scratch = 4 * bb * hidden * 4
    total = 2 * 2 * gx_blk + 2 * 2 * hs_blk + 2 * w_blk + scratch
    return int(min(64 << 20, max(16 << 20, 2 * total + (2 << 20))))


# ---------------------------------------------------------------------------
# Forward pass
# ---------------------------------------------------------------------------
def biatt_rnn_forward(input_ids, attention_mask, params, *,
                      batch_block=None, seq_chunk=None):
    """input_ids: int32 (B, S); attention_mask: float32 (B, S).
    Returns (logits (B, num_classes), att (B, S))."""
    emb = params["embedding"]                         # (V, E)
    B, S = input_ids.shape
    H = params["w_hh_f"].shape[1]
    assert params["att_b"].shape[0] == S, \
        "Attention_LBSA bias is tied to max_length; call with the S it was built for"

    # ---- weight prep (gate reorder, bias fold, fused block-diag recurrent weight) ----
    wih_f = _reorder_ifog(params["w_ih_f"])           # (4H, E)
    wih_b = _reorder_ifog(params["w_ih_b"])
    bias_f = _reorder_ifog(params["b_ih_f"] + params["b_hh_f"])   # (4H,)
    bias_b = _reorder_ifog(params["b_ih_b"] + params["b_hh_b"])

    whh_f_t = _reorder_ifog(params["w_hh_f"]).T       # (H, 4H)
    whh_b_t = _reorder_ifog(params["w_hh_b"]).T
    z = jnp.zeros_like(whh_f_t)
    whh_blk = jnp.concatenate(
        [jnp.concatenate([whh_f_t, z], axis=1),
         jnp.concatenate([z, whh_b_t], axis=1)], axis=0).astype(jnp.bfloat16)  # (2H, 8H)

    # ---- XLA glue: embedding gather (dropout == identity), time-major, bf16 ----
    x_tm = jnp.transpose(emb[input_ids], (1, 0, 2)).astype(jnp.bfloat16)   # (S, B, E)

    # Hoisted input projection: one bf16 MXU matmul per direction, bias folded, bf16 out.
    gx_f = (jnp.einsum("sbe,ge->sbg", x_tm, wih_f.astype(jnp.bfloat16),
                       preferred_element_type=jnp.float32)
            + bias_f).astype(jnp.bfloat16)            # (S, B, 4H)
    gx_b = (jnp.einsum("sbe,ge->sbg", x_tm, wih_b.astype(jnp.bfloat16),
                       preferred_element_type=jnp.float32)
            + bias_b).astype(jnp.bfloat16)

    # ---- batch padding (sublane rule) and tile selection ----
    b_pad = -(-B // 8) * 8
    if b_pad != B:
        pad = ((0, 0), (0, b_pad - B), (0, 0))
        gx_f = jnp.pad(gx_f, pad)
        gx_b = jnp.pad(gx_b, pad)
    bb = batch_block or _pick_batch_tile(b_pad)
    assert b_pad % bb == 0 and bb % 8 == 0, "batch tile must be a multiple of 8 dividing padded B"
    chunk = seq_chunk or _pick_seq_chunk(S, bb, H)
    assert S % chunk == 0, "sequence chunk must divide S"
    nc = S // chunk

    kernel = functools.partial(_bilstm_kernel, hidden_size=H, chunk_len=chunk)

    hs_f, hs_b = pl.pallas_call(
        kernel,
        out_shape=(jax.ShapeDtypeStruct((S, b_pad, H), jnp.bfloat16),
                   jax.ShapeDtypeStruct((S, b_pad, H), jnp.bfloat16)),
        grid_spec=pltpu.PrefetchScalarGridSpec(
            num_scalar_prefetch=0,
            grid=(b_pad // bb, nc),
            in_specs=[
                pl.BlockSpec((chunk, bb, 4 * H), lambda b, k: (k, b, 0)),               # gx fwd
                pl.BlockSpec((chunk, bb, 4 * H), lambda b, k, nc=nc: (nc - 1 - k, b, 0)),  # gx bwd (reversed)
                pl.BlockSpec((2 * H, 8 * H), lambda b, k: (0, 0)),                       # block-diag W_hh^T
            ],
            out_specs=[
                pl.BlockSpec((chunk, bb, H), lambda b, k: (k, b, 0)),                    # h_seq fwd
                pl.BlockSpec((chunk, bb, H), lambda b, k, nc=nc: (nc - 1 - k, b, 0)),    # h_seq bwd
            ],
            scratch_shapes=[pltpu.VMEM((4, bb, H), jnp.float32)],   # [h_f, c_f, h_b, c_b]
        ),
        compiler_params=pltpu.CompilerParams(
            dimension_semantics=("parallel", "arbitrary"),
            vmem_limit_bytes=_vmem_limit_bytes(chunk, bb, H)),
    )(gx_f, gx_b, whh_blk)

    if b_pad != B:
        hs_f = hs_f[:, :B]
        hs_b = hs_b[:, :B]

    # ---- Attention_LBSA (tiny; XLA glue, kept in time-major layout) ----
    hw = params["att_w"][:, 0]                        # (2H,)
    eij = (jnp.einsum("sbh,h->bs", hs_f, hw[:H].astype(jnp.bfloat16),
                      preferred_element_type=jnp.float32)
           + jnp.einsum("sbh,h->bs", hs_b, hw[H:].astype(jnp.bfloat16),
                        preferred_element_type=jnp.float32)
           + params["att_b"][None, :])                # (B, S)
    eij = jnp.tanh(eij)
    a = jax.nn.softmax(eij, axis=1)
    a = a * attention_mask
    a = a / (jnp.sum(a, axis=1, keepdims=True) + 1e-10)

    a_bf = a.astype(jnp.bfloat16)
    h_att_f = jnp.einsum("sbh,bs->bh", hs_f, a_bf, preferred_element_type=jnp.float32)
    h_att_b = jnp.einsum("sbh,bs->bh", hs_b, a_bf, preferred_element_type=jnp.float32)
    h_att = jnp.concatenate([h_att_f, h_att_b], axis=-1)          # (B, 2H)

    # dropout_fc == identity (inference)
    conc = jax.nn.relu(h_att @ params["w_lin"].T + params["b_lin"])   # (B, batch_size)
    logits = conc @ params["w_out"].T + params["b_out"]               # (B, num_classes)
    return logits, a


# ---------------------------------------------------------------------------
# Pure-JAX f32 reference (mirrors the PyTorch forward, for verification)
# ---------------------------------------------------------------------------
def biatt_rnn_reference(input_ids, attention_mask, params):
    emb = params["embedding"]
    H = params["w_hh_f"].shape[1]
    x = emb[input_ids]                                # (B, S, E)
    B, S, _ = x.shape

    def run_dir(x_tm, w_ih, w_hh, b_ih, b_hh):
        def step(carry, x_t):
            h, c = carry
            gates = x_t @ w_ih.T + h @ w_hh.T + b_ih + b_hh
            i = jax.nn.sigmoid(gates[:, 0 * H:1 * H])
            f = jax.nn.sigmoid(gates[:, 1 * H:2 * H])
            g = jnp.tanh(gates[:, 2 * H:3 * H])
            o = jax.nn.sigmoid(gates[:, 3 * H:4 * H])
            c = f * c + i * g
            h = o * jnp.tanh(c)
            return (h, c), h
        zz = jnp.zeros((B, H), jnp.float32)
        _, hs = jax.lax.scan(step, (zz, zz), x_tm)
        return hs                                     # (S, B, H)

    x_tm = jnp.transpose(x, (1, 0, 2))
    hs_f = run_dir(x_tm, params["w_ih_f"], params["w_hh_f"],
                   params["b_ih_f"], params["b_hh_f"])
    hs_b = run_dir(x_tm[::-1], params["w_ih_b"], params["w_hh_b"],
                   params["b_ih_b"], params["b_hh_b"])[::-1]
    h_seq = jnp.concatenate([jnp.transpose(hs_f, (1, 0, 2)),
                             jnp.transpose(hs_b, (1, 0, 2))], axis=-1)

    eij = jnp.tanh((h_seq.reshape(-1, 2 * H) @ params["att_w"]).reshape(B, S)
                   + params["att_b"])
    a = jax.nn.softmax(eij, axis=1)
    a = a * attention_mask
    a = a / (jnp.sum(a, axis=1, keepdims=True) + 1e-10)
    h_att = jnp.sum(h_seq * a[:, :, None], axis=1)

    conc = jax.nn.relu(h_att @ params["w_lin"].T + params["b_lin"])
    logits = conc @ params["w_out"].T + params["b_out"]
    return logits, a


def make_params(key, vocab, embed, hidden, seq_len, lin_dim, num_classes):
    ks = jax.random.split(key, 15)
    s = 0.1
    n = lambda k, shape: s * jax.random.normal(k, shape, jnp.float32)
    return {
        "embedding": n(ks[0], (vocab, embed)),
        "w_ih_f": n(ks[1], (4 * hidden, embed)),
        "w_hh_f": n(ks[2], (4 * hidden, hidden)),
        "b_ih_f": n(ks[3], (4 * hidden,)),
        "b_hh_f": n(ks[4], (4 * hidden,)),
        "w_ih_b": n(ks[5], (4 * hidden, embed)),
        "w_hh_b": n(ks[6], (4 * hidden, hidden)),
        "b_ih_b": n(ks[7], (4 * hidden,)),
        "b_hh_b": n(ks[8], (4 * hidden,)),
        "att_w": n(ks[9], (2 * hidden, 1)),           # Attention_LBSA weight
        "att_b": n(ks[10], (seq_len,)),               # Attention_LBSA bias (step_dim)
        "w_lin": n(ks[11], (lin_dim, 2 * hidden)),    # linear: 2H -> batch_size
        "b_lin": n(ks[12], (lin_dim,)),
        "w_out": n(ks[13], (num_classes, lin_dim)),   # out: batch_size -> num_classes
        "b_out": n(ks[14], (num_classes,)),
    }


if __name__ == "__main__":
    VOCAB, EMBED, HIDDEN, CLASSES = 50, 32, 32, 3
    BATCH, SEQ = 16, 8     # module's args['batch_size'] also sizes the penultimate linear

    key = jax.random.PRNGKey(0)
    pkey, xkey, lkey = jax.random.split(key, 3)
    params = make_params(pkey, VOCAB, EMBED, HIDDEN, SEQ, BATCH, CLASSES)

    input_ids = jax.random.randint(xkey, (BATCH, SEQ), 0, VOCAB, dtype=jnp.int32)
    lengths = jax.random.randint(lkey, (BATCH,), 3, SEQ + 1, dtype=jnp.int32)
    attention_mask = (jnp.arange(SEQ)[None, :] < lengths[:, None]).astype(jnp.float32)

    # batch_block=8 -> 2 parallel batch tiles; seq_chunk=4 -> 2 sequence chunks,
    # exercising both grid axes (incl. the reversed-chunk backward index maps).
    fwd = jax.jit(functools.partial(biatt_rnn_forward, batch_block=8, seq_chunk=4))
    logits, att = jax.block_until_ready(fwd(input_ids, attention_mask, params))
    ref_logits, ref_att = jax.block_until_ready(
        jax.jit(biatt_rnn_reference)(input_ids, attention_mask, params))

    assert logits.shape == (BATCH, CLASSES)
    assert att.shape == (BATCH, SEQ)
    # Tolerance loosened vs the f32 reference: the input projection, the recurrence
    # matmul, the stored gates and the hidden-sequence outputs are all bf16 (f32
    # accumulation), per the perf review.
    np.testing.assert_allclose(np.asarray(logits), np.asarray(ref_logits),
                               rtol=3e-2, atol=2e-2)
    np.testing.assert_allclose(np.asarray(att), np.asarray(ref_att),
                               rtol=3e-2, atol=2e-2)
    print("KERNEL_OK")
</pallas_src>

<mosaic_0001>
module attributes {stable_mosaic.version = 11 : i64} {
  func.func @_bilstm_kernel(%arg0: i32, %arg1: i32, %arg2: memref<4x8x128xbf16, #tpu.memory_space<vmem>>, %arg3: memref<4x8x128xbf16, #tpu.memory_space<vmem>>, %arg4: memref<64x256xbf16, #tpu.memory_space<vmem>>, %arg5: memref<4x8x32xbf16, #tpu.memory_space<vmem>>, %arg6: memref<4x8x32xbf16, #tpu.memory_space<vmem>>, %arg7: memref<4x8x32xf32, #tpu.memory_space<vmem>>) attributes {dimension_semantics = [#tpu.dimension_semantics<parallel>, #tpu.dimension_semantics<arbitrary>], iteration_bounds = array<i64: 2, 2>, scalar_prefetch = 0 : i64, scratch_operands = 1 : i64, tpu.core_type = #tpu.core_type<tc>, window_params = [{transform_indices = @transform_0, window_bounds = array<i64: 4, 8, 128>}, {transform_indices = @transform_1, window_bounds = array<i64: 4, 8, 128>}, {pipeline_mode = #tpu.pipeline_mode<synchronous>, transform_indices = @transform_2, window_bounds = array<i64: 64, 256>}, {transform_indices = @transform_3, window_bounds = array<i64: 4, 8, 32>}, {transform_indices = @transform_4, window_bounds = array<i64: 4, 8, 32>}]} {
    %c0_i32 = arith.constant 0 : i32
    %0 = arith.cmpi eq, %arg1, %c0_i32 : i32
    %1 = arith.extui %0 : i1 to i32
    %c0_i32_0 = arith.constant 0 : i32
    %2 = arith.cmpi ne, %1, %c0_i32_0 : i32
    scf.if %2 {
      %cst_77 = arith.constant 0.000000e+00 : f32
      %259 = vector.broadcast %cst_77 : f32 to vector<4x8x32xf32>
      %c0_78 = arith.constant 0 : index
      %c0_79 = arith.constant 0 : index
      %c0_80 = arith.constant 0 : index
      %260 = vector.load %arg7[%c0_78, %c0_79, %c0_80] : memref<4x8x32xf32, #tpu.memory_space<vmem>>, vector<4x8x32xf32>
      tpu.vector_store %arg7[%c0_78, %c0_79, %c0_80], %259 {strides = array<i32>} : memref<4x8x32xf32, #tpu.memory_space<vmem>>, vector<4x8x32xf32>,
    } else {
    }
    %c0 = arith.constant 0 : index
    %c0_1 = arith.constant 0 : index
    %c0_2 = arith.constant 0 : index
    %3 = vector.load %arg7[%c0, %c0_1, %c0_2] : memref<4x8x32xf32, #tpu.memory_space<vmem>>, vector<1x8x32xf32>
    %4 = vector.shape_cast %3 : vector<1x8x32xf32> to vector<8x32xf32>
    %c1 = arith.constant 1 : index
    %c0_3 = arith.constant 0 : index
    %c0_4 = arith.constant 0 : index
    %5 = vector.load %arg7[%c1, %c0_3, %c0_4] : memref<4x8x32xf32, #tpu.memory_space<vmem>>, vector<1x8x32xf32>
    %6 = vector.shape_cast %5 : vector<1x8x32xf32> to vector<8x32xf32>
    %c2 = arith.constant 2 : index
    %c0_5 = arith.constant 0 : index
    %c0_6 = arith.constant 0 : index
    %7 = vector.load %arg7[%c2, %c0_5, %c0_6] : memref<4x8x32xf32, #tpu.memory_space<vmem>>, vector<1x8x32xf32>
    %8 = vector.shape_cast %7 : vector<1x8x32xf32> to vector<8x32xf32>
    %c3 = arith.constant 3 : index
    %c0_7 = arith.constant 0 : index
    %c0_8 = arith.constant 0 : index
    %9 = vector.load %arg7[%c3, %c0_7, %c0_8] : memref<4x8x32xf32, #tpu.memory_space<vmem>>, vector<1x8x32xf32>
    %10 = vector.shape_cast %9 : vector<1x8x32xf32> to vector<8x32xf32>
    %c0_i32_9 = arith.constant 0 : i32
    %c3_i32 = arith.constant 3 : i32
    %11 = arith.subi %c3_i32, %c0_i32_9 : i32
    %12 = tpu.concatenate %4, %8 in 1 : vector<8x32xf32>, vector<8x32xf32> -> vector<8x64xf32>
    %13 = arith.truncf %12 : vector<8x64xf32> to vector<8x64xbf16>
    %c0_10 = arith.constant 0 : index
    %c0_11 = arith.constant 0 : index
    %14 = vector.load %arg4[%c0_10, %c0_11] : memref<64x256xbf16, #tpu.memory_space<vmem>>, vector<64x256xbf16>
    %cst = arith.constant dense<0.000000e+00> : vector<8x256xf32>
    %15 = tpu.matmul %13, %14, %cst {dimension_numbers = #tpu.dot_dimension_numbers<[1], [0], [0], [1], [0, 0, 1, 1], [], []>} : vector<8x64xbf16>, vector<64x256xbf16>, vector<8x256xf32> -> vector<8x256xf32>
    %16 = arith.index_cast %c0_i32_9 : i32 to index
    %c0_12 = arith.constant 0 : index
    %c0_13 = arith.constant 0 : index
    %17 = vector.load %arg2[%16, %c0_12, %c0_13] : memref<4x8x128xbf16, #tpu.memory_space<vmem>>, vector<1x8x128xbf16>
    %18 = vector.shape_cast %17 : vector<1x8x128xbf16> to vector<8x128xbf16>
    %19 = arith.extf %18 : vector<8x128xbf16> to vector<8x128xf32>
    %20 = vector.extract_strided_slice %15 {offsets = [0, 0], sizes = [8, 128], strides = [1, 1]} : vector<8x256xf32> to vector<8x128xf32>
    %21 = arith.addf %19, %20 : vector<8x128xf32>
    %22 = arith.index_cast %11 : i32 to index
    %c0_14 = arith.constant 0 : index
    %c0_15 = arith.constant 0 : index
    %23 = vector.load %arg3[%22, %c0_14, %c0_15] : memref<4x8x128xbf16, #tpu.memory_space<vmem>>, vector<1x8x128xbf16>
    %24 = vector.shape_cast %23 : vector<1x8x128xbf16> to vector<8x128xbf16>
    %25 = arith.extf %24 : vector<8x128xbf16> to vector<8x128xf32>
    %26 = vector.extract_strided_slice %15 {offsets = [0, 128], sizes = [8, 128], strides = [1, 1]} : vector<8x256xf32> to vector<8x128xf32>
    %27 = arith.addf %25, %26 : vector<8x128xf32>
    %28 = vector.extract_strided_slice %21 {offsets = [0, 0], sizes = [8, 96], strides = [1, 1]} : vector<8x128xf32> to vector<8x96xf32>
    %29 = arith.negf %28 : vector<8x96xf32>
    %30 = math.exp %29 : vector<8x96xf32>
    %cst_16 = arith.constant 1.000000e+00 : f32
    %31 = vector.broadcast %cst_16 : f32 to vector<8x96xf32>
    %32 = arith.addf %31, %30 : vector<8x96xf32>
    %33 = arith.divf %31, %32 : vector<8x96xf32>
    %34 = vector.extract_strided_slice %21 {offsets = [0, 96], sizes = [8, 32], strides = [1, 1]} : vector<8x128xf32> to vector<8x32xf32>
    %35 = math.tanh %34 : vector<8x32xf32>
    %36 = vector.extract_strided_slice %33 {offsets = [0, 32], sizes = [8, 32], strides = [1, 1]} : vector<8x96xf32> to vector<8x32xf32>
    %37 = arith.mulf %36, %6 : vector<8x32xf32>
    %38 = vector.extract_strided_slice %33 {offsets = [0, 0], sizes = [8, 32], strides = [1, 1]} : vector<8x96xf32> to vector<8x32xf32>
    %39 = arith.mulf %38, %35 : vector<8x32xf32>
    %40 = arith.addf %37, %39 : vector<8x32xf32>
    %41 = vector.extract_strided_slice %33 {offsets = [0, 64], sizes = [8, 32], strides = [1, 1]} : vector<8x96xf32> to vector<8x32xf32>
    %42 = math.tanh %40 : vector<8x32xf32>
    %43 = arith.mulf %41, %42 : vector<8x32xf32>
    %44 = vector.extract_strided_slice %27 {offsets = [0, 0], sizes = [8, 96], strides = [1, 1]} : vector<8x128xf32> to vector<8x96xf32>
    %45 = arith.negf %44 : vector<8x96xf32>
    %46 = math.exp %45 : vector<8x96xf32>
    %cst_17 = arith.constant 1.000000e+00 : f32
    %47 = vector.broadcast %cst_17 : f32 to vector<8x96xf32>
    %48 = arith.addf %47, %46 : vector<8x96xf32>
    %49 = arith.divf %47, %48 : vector<8x96xf32>
    %50 = vector.extract_strided_slice %27 {offsets = [0, 96], sizes = [8, 32], strides = [1, 1]} : vector<8x128xf32> to vector<8x32xf32>
    %51 = math.tanh %50 : vector<8x32xf32>
    %52 = vector.extract_strided_slice %49 {offsets = [0, 32], sizes = [8, 32], strides = [1, 1]} : vector<8x96xf32> to vector<8x32xf32>
    %53 = arith.mulf %52, %10 : vector<8x32xf32>
    %54 = vector.extract_strided_slice %49 {offsets = [0, 0], sizes = [8, 32], strides = [1, 1]} : vector<8x96xf32> to vector<8x32xf32>
    %55 = arith.mulf %54, %51 : vector<8x32xf32>
    %56 = arith.addf %53, %55 : vector<8x32xf32>
    %57 = vector.extract_strided_slice %49 {offsets = [0, 64], sizes = [8, 32], strides = [1, 1]} : vector<8x96xf32> to vector<8x32xf32>
    %58 = math.tanh %56 : vector<8x32xf32>
    %59 = arith.mulf %57, %58 : vector<8x32xf32>
    %60 = arith.truncf %43 : vector<8x32xf32> to vector<8x32xbf16>
    %61 = arith.index_cast %c0_i32_9 : i32 to index
    %c0_18 = arith.constant 0 : index
    %c0_19 = arith.constant 0 : index
    %62 = vector.load %arg5[%61, %c0_18, %c0_19] : memref<4x8x32xbf16, #tpu.memory_space<vmem>>, vector<1x8x32xbf16>
    %63 = vector.shape_cast %62 : vector<1x8x32xbf16> to vector<8x32xbf16>
    %64 = vector.shape_cast %60 : vector<8x32xbf16> to vector<1x8x32xbf16>
    tpu.vector_store %arg5[%61, %c0_18, %c0_19], %64 {strides = array<i32>} : memref<4x8x32xbf16, #tpu.memory_space<vmem>>, vector<1x8x32xbf16>,
    %65 = arith.truncf %59 : vector<8x32xf32> to vector<8x32xbf16>
    %66 = arith.index_cast %11 : i32 to index
    %c0_20 = arith.constant 0 : index
    %c0_21 = arith.constant 0 : index
    %67 = vector.load %arg6[%66, %c0_20, %c0_21] : memref<4x8x32xbf16, #tpu.memory_space<vmem>>, vector<1x8x32xbf16>
    %68 = vector.shape_cast %67 : vector<1x8x32xbf16> to vector<8x32xbf16>
    %69 = vector.shape_cast %65 : vector<8x32xbf16> to vector<1x8x32xbf16>
    tpu.vector_store %arg6[%66, %c0_20, %c0_21], %69 {strides = array<i32>} : memref<4x8x32xbf16, #tpu.memory_space<vmem>>, vector<1x8x32xbf16>,
    %c1_i32 = arith.constant 1 : i32
    %c3_i32_22 = arith.constant 3 : i32
    %70 = arith.subi %c3_i32_22, %c1_i32 : i32
    %71 = tpu.concatenate %43, %59 in 1 : vector<8x32xf32>, vector<8x32xf32> -> vector<8x64xf32>
    %72 = arith.truncf %71 : vector<8x64xf32> to vector<8x64xbf16>
    %c0_23 = arith.constant 0 : index
    %c0_24 = arith.constant 0 : index
    %73 = vector.load %arg4[%c0_23, %c0_24] : memref<64x256xbf16, #tpu.memory_space<vmem>>, vector<64x256xbf16>
    %cst_25 = arith.constant dense<0.000000e+00> : vector<8x256xf32>
    %74 = tpu.matmul %72, %73, %cst_25 {dimension_numbers = #tpu.dot_dimension_numbers<[1], [0], [0], [1], [0, 0, 1, 1], [], []>} : vector<8x64xbf16>, vector<64x256xbf16>, vector<8x256xf32> -> vector<8x256xf32>
    %75 = arith.index_cast %c1_i32 : i32 to index
    %c0_26 = arith.constant 0 : index
    %c0_27 = arith.constant 0 : index
    %76 = vector.load %arg2[%75, %c0_26, %c0_27] : memref<4x8x128xbf16, #tpu.memory_space<vmem>>, vector<1x8x128xbf16>
    %77 = vector.shape_cast %76 : vector<1x8x128xbf16> to vector<8x128xbf16>
    %78 = arith.extf %77 : vector<8x128xbf16> to vector<8x128xf32>
    %79 = vector.extract_strided_slice %74 {offsets = [0, 0], sizes = [8, 128], strides = [1, 1]} : vector<8x256xf32> to vector<8x128xf32>
    %80 = arith.addf %78, %79 : vector<8x128xf32>
    %81 = arith.index_cast %70 : i32 to index
    %c0_28 = arith.constant 0 : index
    %c0_29 = arith.constant 0 : index
    %82 = vector.load %arg3[%81, %c0_28, %c0_29] : memref<4x8x128xbf16, #tpu.memory_space<vmem>>, vector<1x8x128xbf16>
    %83 = vector.shape_cast %82 : vector<1x8x128xbf16> to vector<8x128xbf16>
    %84 = arith.extf %83 : vector<8x128xbf16> to vector<8x128xf32>
    %85 = vector.extract_strided_slice %74 {offsets = [0, 128], sizes = [8, 128], strides = [1, 1]} : vector<8x256xf32> to vector<8x128xf32>
    %86 = arith.addf %84, %85 : vector<8x128xf32>
    %87 = vector.extract_strided_slice %80 {offsets = [0, 0], sizes = [8, 96], strides = [1, 1]} : vector<8x128xf32> to vector<8x96xf32>
    %88 = arith.negf %87 : vector<8x96xf32>
    %89 = math.exp %88 : vector<8x96xf32>
    %cst_30 = arith.constant 1.000000e+00 : f32
    %90 = vector.broadcast %cst_30 : f32 to vector<8x96xf32>
    %91 = arith.addf %90, %89 : vector<8x96xf32>
    %92 = arith.divf %90, %91 : vector<8x96xf32>
    %93 = vector.extract_strided_slice %80 {offsets = [0, 96], sizes = [8, 32], strides = [1, 1]} : vector<8x128xf32> to vector<8x32xf32>
    %94 = math.tanh %93 : vector<8x32xf32>
    %95 = vector.extract_strided_slice %92 {offsets = [0, 32], sizes = [8, 32], strides = [1, 1]} : vector<8x96xf32> to vector<8x32xf32>
    %96 = arith.mulf %95, %40 : vector<8x32xf32>
    %97 = vector.extract_strided_slice %92 {offsets = [0, 0], sizes = [8, 32], strides = [1, 1]} : vector<8x96xf32> to vector<8x32xf32>
    %98 = arith.mulf %97, %94 : vector<8x32xf32>
    %99 = arith.addf %96, %98 : vector<8x32xf32>
    %100 = vector.extract_strided_slice %92 {offsets = [0, 64], sizes = [8, 32], strides = [1, 1]} : vector<8x96xf32> to vector<8x32xf32>
    %101 = math.tanh %99 : vector<8x32xf32>
    %102 = arith.mulf %100, %101 : vector<8x32xf32>
    %103 = vector.extract_strided_slice %86 {offsets = [0, 0], sizes = [8, 96], strides = [1, 1]} : vector<8x128xf32> to vector<8x96xf32>
    %104 = arith.negf %103 : vector<8x96xf32>
    %105 = math.exp %104 : vector<8x96xf32>
    %cst_31 = arith.constant 1.000000e+00 : f32
    %106 = vector.broadcast %cst_31 : f32 to vector<8x96xf32>
    %107 = arith.addf %106, %105 : vector<8x96xf32>
    %108 = arith.divf %106, %107 : vector<8x96xf32>
    %109 = vector.extract_strided_slice %86 {offsets = [0, 96], sizes = [8, 32], strides = [1, 1]} : vector<8x128xf32> to vector<8x32xf32>
    %110 = math.tanh %109 : vector<8x32xf32>
    %111 = vector.extract_strided_slice %108 {offsets = [0, 32], sizes = [8, 32], strides = [1, 1]} : vector<8x96xf32> to vector<8x32xf32>
    %112 = arith.mulf %111, %56 : vector<8x32xf32>
    %113 = vector.extract_strided_slice %108 {offsets = [0, 0], sizes = [8, 32], strides = [1, 1]} : vector<8x96xf32> to vector<8x32xf32>
    %114 = arith.mulf %113, %110 : vector<8x32xf32>
    %115 = arith.addf %112, %114 : vector<8x32xf32>
    %116 = vector.extract_strided_slice %108 {offsets = [0, 64], sizes = [8, 32], strides = [1, 1]} : vector<8x96xf32> to vector<8x32xf32>
    %117 = math.tanh %115 : vector<8x32xf32>
    %118 = arith.mulf %116, %117 : vector<8x32xf32>
    %119 = arith.truncf %102 : vector<8x32xf32> to vector<8x32xbf16>
    %120 = arith.index_cast %c1_i32 : i32 to index
    %c0_32 = arith.constant 0 : index
    %c0_33 = arith.constant 0 : index
    %121 = vector.load %arg5[%120, %c0_32, %c0_33] : memref<4x8x32xbf16, #tpu.memory_space<vmem>>, vector<1x8x32xbf16>
    %122 = vector.shape_cast %121 : vector<1x8x32xbf16> to vector<8x32xbf16>
    %123 = vector.shape_cast %119 : vector<8x32xbf16> to vector<1x8x32xbf16>
    tpu.vector_store %arg5[%120, %c0_32, %c0_33], %123 {strides = array<i32>} : memref<4x8x32xbf16, #tpu.memory_space<vmem>>, vector<1x8x32xbf16>,
    %124 = arith.truncf %118 : vector<8x32xf32> to vector<8x32xbf16>
    %125 = arith.index_cast %70 : i32 to index
    %c0_34 = arith.constant 0 : index
    %c0_35 = arith.constant 0 : index
    %126 = vector.load %arg6[%125, %c0_34, %c0_35] : memref<4x8x32xbf16, #tpu.memory_space<vmem>>, vector<1x8x32xbf16>
    %127 = vector.shape_cast %126 : vector<1x8x32xbf16> to vector<8x32xbf16>
    %128 = vector.shape_cast %124 : vector<8x32xbf16> to vector<1x8x32xbf16>
    tpu.vector_store %arg6[%125, %c0_34, %c0_35], %128 {strides = array<i32>} : memref<4x8x32xbf16, #tpu.memory_space<vmem>>, vector<1x8x32xbf16>,
    %c2_i32 = arith.constant 2 : i32
    %c3_i32_36 = arith.constant 3 : i32
    %129 = arith.subi %c3_i32_36, %c2_i32 : i32
    %130 = tpu.concatenate %102, %118 in 1 : vector<8x32xf32>, vector<8x32xf32> -> vector<8x64xf32>
    %131 = arith.truncf %130 : vector<8x64xf32> to vector<8x64xbf16>
    %c0_37 = arith.constant 0 : index
    %c0_38 = arith.constant 0 : index
    %132 = vector.load %arg4[%c0_37, %c0_38] : memref<64x256xbf16, #tpu.memory_space<vmem>>, vector<64x256xbf16>
    %cst_39 = arith.constant dense<0.000000e+00> : vector<8x256xf32>
    %133 = tpu.matmul %131, %132, %cst_39 {dimension_numbers = #tpu.dot_dimension_numbers<[1], [0], [0], [1], [0, 0, 1, 1], [], []>} : vector<8x64xbf16>, vector<64x256xbf16>, vector<8x256xf32> -> vector<8x256xf32>
    %134 = arith.index_cast %c2_i32 : i32 to index
    %c0_40 = arith.constant 0 : index
    %c0_41 = arith.constant 0 : index
    %135 = vector.load %arg2[%134, %c0_40, %c0_41] : memref<4x8x128xbf16, #tpu.memory_space<vmem>>, vector<1x8x128xbf16>
    %136 = vector.shape_cast %135 : vector<1x8x128xbf16> to vector<8x128xbf16>
    %137 = arith.extf %136 : vector<8x128xbf16> to vector<8x128xf32>
    %138 = vector.extract_strided_slice %133 {offsets = [0, 0], sizes = [8, 128], strides = [1, 1]} : vector<8x256xf32> to vector<8x128xf32>
    %139 = arith.addf %137, %138 : vector<8x128xf32>
    %140 = arith.index_cast %129 : i32 to index
    %c0_42 = arith.constant 0 : index
    %c0_43 = arith.constant 0 : index
    %141 = vector.load %arg3[%140, %c0_42, %c0_43] : memref<4x8x128xbf16, #tpu.memory_space<vmem>>, vector<1x8x128xbf16>
    %142 = vector.shape_cast %141 : vector<1x8x128xbf16> to vector<8x128xbf16>
    %143 = arith.extf %142 : vector<8x128xbf16> to vector<8x128xf32>
    %144 = vector.extract_strided_slice %133 {offsets = [0, 128], sizes = [8, 128], strides = [1, 1]} : vector<8x256xf32> to vector<8x128xf32>
    %145 = arith.addf %143, %144 : vector<8x128xf32>
    %146 = vector.extract_strided_slice %139 {offsets = [0, 0], sizes = [8, 96], strides = [1, 1]} : vector<8x128xf32> to vector<8x96xf32>
    %147 = arith.negf %146 : vector<8x96xf32>
    %148 = math.exp %147 : vector<8x96xf32>
    %cst_44 = arith.constant 1.000000e+00 : f32
    %149 = vector.broadcast %cst_44 : f32 to vector<8x96xf32>
    %150 = arith.addf %149, %148 : vector<8x96xf32>
    %151 = arith.divf %149, %150 : vector<8x96xf32>
    %152 = vector.extract_strided_slice %139 {offsets = [0, 96], sizes = [8, 32], strides = [1, 1]} : vector<8x128xf32> to vector<8x32xf32>
    %153 = math.tanh %152 : vector<8x32xf32>
    %154 = vector.extract_strided_slice %151 {offsets = [0, 32], sizes = [8, 32], strides = [1, 1]} : vector<8x96xf32> to vector<8x32xf32>
    %155 = arith.mulf %154, %99 : vector<8x32xf32>
    %156 = vector.extract_strided_slice %151 {offsets = [0, 0], sizes = [8, 32], strides = [1, 1]} : vector<8x96xf32> to vector<8x32xf32>
    %157 = arith.mulf %156, %153 : vector<8x32xf32>
    %158 = arith.addf %155, %157 : vector<8x32xf32>
    %159 = vector.extract_strided_slice %151 {offsets = [0, 64], sizes = [8, 32], strides = [1, 1]} : vector<8x96xf32> to vector<8x32xf32>
    %160 = math.tanh %158 : vector<8x32xf32>
    %161 = arith.mulf %159, %160 : vector<8x32xf32>
    %162 = vector.extract_strided_slice %145 {offsets = [0, 0], sizes = [8, 96], strides = [1, 1]} : vector<8x128xf32> to vector<8x96xf32>
    %163 = arith.negf %162 : vector<8x96xf32>
    %164 = math.exp %163 : vector<8x96xf32>
    %cst_45 = arith.constant 1.000000e+00 : f32
    %165 = vector.broadcast %cst_45 : f32 to vector<8x96xf32>
    %166 = arith.addf %165, %164 : vector<8x96xf32>
    %167 = arith.divf %165, %166 : vector<8x96xf32>
    %168 = vector.extract_strided_slice %145 {offsets = [0, 96], sizes = [8, 32], strides = [1, 1]} : vector<8x128xf32> to vector<8x32xf32>
    %169 = math.tanh %168 : vector<8x32xf32>
    %170 = vector.extract_strided_slice %167 {offsets = [0, 32], sizes = [8, 32], strides = [1, 1]} : vector<8x96xf32> to vector<8x32xf32>
    %171 = arith.mulf %170, %115 : vector<8x32xf32>
    %172 = vector.extract_strided_slice %167 {offsets = [0, 0], sizes = [8, 32], strides = [1, 1]} : vector<8x96xf32> to vector<8x32xf32>
    %173 = arith.mulf %172, %169 : vector<8x32xf32>
    %174 = arith.addf %171, %173 : vector<8x32xf32>
    %175 = vector.extract_strided_slice %167 {offsets = [0, 64], sizes = [8, 32], strides = [1, 1]} : vector<8x96xf32> to vector<8x32xf32>
    %176 = math.tanh %174 : vector<8x32xf32>
    %177 = arith.mulf %175, %176 : vector<8x32xf32>
    %178 = arith.truncf %161 : vector<8x32xf32> to vector<8x32xbf16>
    %179 = arith.index_cast %c2_i32 : i32 to index
    %c0_46 = arith.constant 0 : index
    %c0_47 = arith.constant 0 : index
    %180 = vector.load %arg5[%179, %c0_46, %c0_47] : memref<4x8x32xbf16, #tpu.memory_space<vmem>>, vector<1x8x32xbf16>
    %181 = vector.shape_cast %180 : vector<1x8x32xbf16> to vector<8x32xbf16>
    %182 = vector.shape_cast %178 : vector<8x32xbf16> to vector<1x8x32xbf16>
    tpu.vector_store %arg5[%179, %c0_46, %c0_47], %182 {strides = array<i32>} : memref<4x8x32xbf16, #tpu.memory_space<vmem>>, vector<1x8x32xbf16>,
    %183 = arith.truncf %177 : vector<8x32xf32> to vector<8x32xbf16>
    %184 = arith.index_cast %129 : i32 to index
    %c0_48 = arith.constant 0 : index
    %c0_49 = arith.constant 0 : index
    %185 = vector.load %arg6[%184, %c0_48, %c0_49] : memref<4x8x32xbf16, #tpu.memory_space<vmem>>, vector<1x8x32xbf16>
    %186 = vector.shape_cast %185 : vector<1x8x32xbf16> to vector<8x32xbf16>
    %187 = vector.shape_cast %183 : vector<8x32xbf16> to vector<1x8x32xbf16>
    tpu.vector_store %arg6[%184, %c0_48, %c0_49], %187 {strides = array<i32>} : memref<4x8x32xbf16, #tpu.memory_space<vmem>>, vector<1x8x32xbf16>,
    %c3_i32_50 = arith.constant 3 : i32
    %c3_i32_51 = arith.constant 3 : i32
    %188 = arith.subi %c3_i32_51, %c3_i32_50 : i32
    %189 = tpu.concatenate %161, %177 in 1 : vector<8x32xf32>, vector<8x32xf32> -> vector<8x64xf32>
    %190 = arith.truncf %189 : vector<8x64xf32> to vector<8x64xbf16>
    %c0_52 = arith.constant 0 : index
    %c0_53 = arith.constant 0 : index
    %191 = vector.load %arg4[%c0_52, %c0_53] : memref<64x256xbf16, #tpu.memory_space<vmem>>, vector<64x256xbf16>
    %cst_54 = arith.constant dense<0.000000e+00> : vector<8x256xf32>
    %192 = tpu.matmul %190, %191, %cst_54 {dimension_numbers = #tpu.dot_dimension_numbers<[1], [0], [0], [1], [0, 0, 1, 1], [], []>} : vector<8x64xbf16>, vector<64x256xbf16>, vector<8x256xf32> -> vector<8x256xf32>
    %193 = arith.index_cast %c3_i32_50 : i32 to index
    %c0_55 = arith.constant 0 : index
    %c0_56 = arith.constant 0 : index
    %194 = vector.load %arg2[%193, %c0_55, %c0_56] : memref<4x8x128xbf16, #tpu.memory_space<vmem>>, vector<1x8x128xbf16>
    %195 = vector.shape_cast %194 : vector<1x8x128xbf16> to vector<8x128xbf16>
    %196 = arith.extf %195 : vector<8x128xbf16> to vector<8x128xf32>
    %197 = vector.extract_strided_slice %192 {offsets = [0, 0], sizes = [8, 128], strides = [1, 1]} : vector<8x256xf32> to vector<8x128xf32>
    %198 = arith.addf %196, %197 : vector<8x128xf32>
    %199 = arith.index_cast %188 : i32 to index
    %c0_57 = arith.constant 0 : index
    %c0_58 = arith.constant 0 : index
    %200 = vector.load %arg3[%199, %c0_57, %c0_58] : memref<4x8x128xbf16, #tpu.memory_space<vmem>>, vector<1x8x128xbf16>
    %201 = vector.shape_cast %200 : vector<1x8x128xbf16> to vector<8x128xbf16>
    %202 = arith.extf %201 : vector<8x128xbf16> to vector<8x128xf32>
    %203 = vector.extract_strided_slice %192 {offsets = [0, 128], sizes = [8, 128], strides = [1, 1]} : vector<8x256xf32> to vector<8x128xf32>
    %204 = arith.addf %202, %203 : vector<8x128xf32>
    %205 = vector.extract_strided_slice %198 {offsets = [0, 0], sizes = [8, 96], strides = [1, 1]} : vector<8x128xf32> to vector<8x96xf32>
    %206 = arith.negf %205 : vector<8x96xf32>
    %207 = math.exp %206 : vector<8x96xf32>
    %cst_59 = arith.constant 1.000000e+00 : f32
    %208 = vector.broadcast %cst_59 : f32 to vector<8x96xf32>
    %209 = arith.addf %208, %207 : vector<8x96xf32>
    %210 = arith.divf %208, %209 : vector<8x96xf32>
    %211 = vector.extract_strided_slice %198 {offsets = [0, 96], sizes = [8, 32], strides = [1, 1]} : vector<8x128xf32> to vector<8x32xf32>
    %212 = math.tanh %211 : vector<8x32xf32>
    %213 = vector.extract_strided_slice %210 {offsets = [0, 32], sizes = [8, 32], strides = [1, 1]} : vector<8x96xf32> to vector<8x32xf32>
    %214 = arith.mulf %213, %158 : vector<8x32xf32>
    %215 = vector.extract_strided_slice %210 {offsets = [0, 0], sizes = [8, 32], strides = [1, 1]} : vector<8x96xf32> to vector<8x32xf32>
    %216 = arith.mulf %215, %212 : vector<8x32xf32>
    %217 = arith.addf %214, %216 : vector<8x32xf32>
    %218 = vector.extract_strided_slice %210 {offsets = [0, 64], sizes = [8, 32], strides = [1, 1]} : vector<8x96xf32> to vector<8x32xf32>
    %219 = math.tanh %217 : vector<8x32xf32>
    %220 = arith.mulf %218, %219 : vector<8x32xf32>
    %221 = vector.extract_strided_slice %204 {offsets = [0, 0], sizes = [8, 96], strides = [1, 1]} : vector<8x128xf32> to vector<8x96xf32>
    %222 = arith.negf %221 : vector<8x96xf32>
    %223 = math.exp %222 : vector<8x96xf32>
    %cst_60 = arith.constant 1.000000e+00 : f32
    %224 = vector.broadcast %cst_60 : f32 to vector<8x96xf32>
    %225 = arith.addf %224, %223 : vector<8x96xf32>
    %226 = arith.divf %224, %225 : vector<8x96xf32>
    %227 = vector.extract_strided_slice %204 {offsets = [0, 96], sizes = [8, 32], strides = [1, 1]} : vector<8x128xf32> to vector<8x32xf32>
    %228 = math.tanh %227 : vector<8x32xf32>
    %229 = vector.extract_strided_slice %226 {offsets = [0, 32], sizes = [8, 32], strides = [1, 1]} : vector<8x96xf32> to vector<8x32xf32>
    %230 = arith.mulf %229, %174 : vector<8x32xf32>
    %231 = vector.extract_strided_slice %226 {offsets = [0, 0], sizes = [8, 32], strides = [1, 1]} : vector<8x96xf32> to vector<8x32xf32>
    %232 = arith.mulf %231, %228 : vector<8x32xf32>
    %233 = arith.addf %230, %232 : vector<8x32xf32>
    %234 = vector.extract_strided_slice %226 {offsets = [0, 64], sizes = [8, 32], strides = [1, 1]} : vector<8x96xf32> to vector<8x32xf32>
    %235 = math.tanh %233 : vector<8x32xf32>
    %236 = arith.mulf %234, %235 : vector<8x32xf32>
    %237 = arith.truncf %220 : vector<8x32xf32> to vector<8x32xbf16>
    %238 = arith.index_cast %c3_i32_50 : i32 to index
    %c0_61 = arith.constant 0 : index
    %c0_62 = arith.constant 0 : index
    %239 = vector.load %arg5[%238, %c0_61, %c0_62] : memref<4x8x32xbf16, #tpu.memory_space<vmem>>, vector<1x8x32xbf16>
    %240 = vector.shape_cast %239 : vector<1x8x32xbf16> to vector<8x32xbf16>
    %241 = vector.shape_cast %237 : vector<8x32xbf16> to vector<1x8x32xbf16>
    tpu.vector_store %arg5[%238, %c0_61, %c0_62], %241 {strides = array<i32>} : memref<4x8x32xbf16, #tpu.memory_space<vmem>>, vector<1x8x32xbf16>,
    %242 = arith.truncf %236 : vector<8x32xf32> to vector<8x32xbf16>
    %243 = arith.index_cast %188 : i32 to index
    %c0_63 = arith.constant 0 : index
    %c0_64 = arith.constant 0 : index
    %244 = vector.load %arg6[%243, %c0_63, %c0_64] : memref<4x8x32xbf16, #tpu.memory_space<vmem>>, vector<1x8x32xbf16>
    %245 = vector.shape_cast %244 : vector<1x8x32xbf16> to vector<8x32xbf16>
    %246 = vector.shape_cast %242 : vector<8x32xbf16> to vector<1x8x32xbf16>
    tpu.vector_store %arg6[%243, %c0_63, %c0_64], %246 {strides = array<i32>} : memref<4x8x32xbf16, #tpu.memory_space<vmem>>, vector<1x8x32xbf16>,
    %c4_i32 = arith.constant 4 : i32
    %c0_65 = arith.constant 0 : index
    %c0_66 = arith.constant 0 : index
    %c0_67 = arith.constant 0 : index
    %247 = vector.load %arg7[%c0_65, %c0_66, %c0_67] : memref<4x8x32xf32, #tpu.memory_space<vmem>>, vector<1x8x32xf32>
    %248 = vector.shape_cast %247 : vector<1x8x32xf32> to vector<8x32xf32>
    %249 = vector.shape_cast %220 : vector<8x32xf32> to vector<1x8x32xf32>
    tpu.vector_store %arg7[%c0_65, %c0_66, %c0_67], %249 {strides = array<i32>} : memref<4x8x32xf32, #tpu.memory_space<vmem>>, vector<1x8x32xf32>,
    %c1_68 = arith.constant 1 : index
    %c0_69 = arith.constant 0 : index
    %c0_70 = arith.constant 0 : index
    %250 = vector.load %arg7[%c1_68, %c0_69, %c0_70] : memref<4x8x32xf32, #tpu.memory_space<vmem>>, vector<1x8x32xf32>
    %251 = vector.shape_cast %250 : vector<1x8x32xf32> to vector<8x32xf32>
    %252 = vector.shape_cast %217 : vector<8x32xf32> to vector<1x8x32xf32>
    tpu.vector_store %arg7[%c1_68, %c0_69, %c0_70], %252 {strides = array<i32>} : memref<4x8x32xf32, #tpu.memory_space<vmem>>, vector<1x8x32xf32>,
    %c2_71 = arith.constant 2 : index
    %c0_72 = arith.constant 0 : index
    %c0_73 = arith.constant 0 : index
    %253 = vector.load %arg7[%c2_71, %c0_72, %c0_73] : memref<4x8x32xf32, #tpu.memory_space<vmem>>, vector<1x8x32xf32>
    %254 = vector.shape_cast %253 : vector<1x8x32xf32> to vector<8x32xf32>
    %255 = vector.shape_cast %236 : vector<8x32xf32> to vector<1x8x32xf32>
    tpu.vector_store %arg7[%c2_71, %c0_72, %c0_73], %255 {strides = array<i32>} : memref<4x8x32xf32, #tpu.memory_space<vmem>>, vector<1x8x32xf32>,
    %c3_74 = arith.constant 3 : index
    %c0_75 = arith.constant 0 : index
    %c0_76 = arith.constant 0 : index
    %256 = vector.load %arg7[%c3_74, %c0_75, %c0_76] : memref<4x8x32xf32, #tpu.memory_space<vmem>>, vector<1x8x32xf32>
    %257 = vector.shape_cast %256 : vector<1x8x32xf32> to vector<8x32xf32>
    %258 = vector.shape_cast %233 : vector<8x32xf32> to vector<1x8x32xf32>
    tpu.vector_store %arg7[%c3_74, %c0_75, %c0_76], %258 {strides = array<i32>} : memref<4x8x32xf32, #tpu.memory_space<vmem>>, vector<1x8x32xf32>,
    return
  }
  func.func @transform_0(%arg0: i32, %arg1: i32) -> (i32, i32, i32) {
    %c0_i32 = arith.constant 0 : i32
    %c0_i32_0 = arith.constant 0 : i32
    return %arg1, %arg0, %c0_i32 : i32, i32, i32
  }
  func.func @transform_1(%arg0: i32, %arg1: i32) -> (i32, i32, i32) {
    %c1_i32 = arith.constant 1 : i32
    %0 = arith.subi %c1_i32, %arg1 : i32
    %c0_i32 = arith.constant 0 : i32
    %c0_i32_0 = arith.constant 0 : i32
    return %0, %arg0, %c0_i32 : i32, i32, i32
  }
  func.func @transform_2(%arg0: i32, %arg1: i32) -> (i32, i32) {
    %c0_i32 = arith.constant 0 : i32
    %c0_i32_0 = arith.constant 0 : i32
    %c0_i32_1 = arith.constant 0 : i32
    return %c0_i32, %c0_i32_0 : i32, i32
  }
  func.func @transform_3(%arg0: i32, %arg1: i32) -> (i32, i32, i32) {
    %c0_i32 = arith.constant 0 : i32
    %c0_i32_0 = arith.constant 0 : i32
    return %arg1, %arg0, %c0_i32 : i32, i32, i32
  }
  func.func @transform_4(%arg0: i32, %arg1: i32) -> (i32, i32, i32) {
    %c1_i32 = arith.constant 1 : i32
    %0 = arith.subi %c1_i32, %arg1 : i32
    %c0_i32 = arith.constant 0 : i32
    %c0_i32_0 = arith.constant 0 : i32
    return %0, %arg0, %c0_i32 : i32, i32, i32
  }
}

</mosaic_0001>

<bundles_post_ra>
// kernel: biatt_rnn_forward.1
= control target key start
LH: loop header
LB: loop body
LE: loop exit
PB: predicated region body
PF: predicated region fallthrough
CT: control target
= control target key end

     0   :  { %s2098_s0 = inlined_call_operand.vmem [shape: bf16[8,16,128], index: 0, kind: input, shape index: {}]   ;;  %s2099_s1 = inlined_call_operand.vmem [shape: bf16[8,16,128], index: 1, kind: input, shape index: {}]   ;;  %s2100_s2 = inlined_call_operand.vmem [shape: bf16[64,256], index: 2, kind: input, shape index: {}]   ;;  %s2101_s3 = inlined_call_operand.vmem [shape: bf16[8,16,32], index: 3, kind: output, shape index: {0}]   ;;  %s2102_s4 = inlined_call_operand.vmem [shape: bf16[8,16,32], index: 4, kind: output, shape index: {1}]  }
   0x1   :  { %2104 = sst [smem:[#allocation7_spill]] %s2098_s0 }
   0x2   :  { %s1722_s15 = smov 0   ;;  %s1724_s16 = smov 0  }
   0x3   :  { %s1726_s17 = smov 0   ;;  %s1728_s18 = smov 0  }
   0x4   :  { %s1730_s19 = smov 0   ;;  %s1732_s20 = smov 0  }
   0x5   :  { %s1734_s21 = smov 0   ;;  %s1736_s22 = smov 0  }
   0x6   :  { %s1738_s23 = smov 0  }
   0x7 LB: > { %s1363_s24 = sadd.s32 4294967295, %s1690_s23   ;;  %s24_s25 = sadd.s32 1, %s1682_s21  ;;  %s1690_s23 = sphi %s1738_s23, %s15_s23   ;;  %s1686_s22 = sphi %s1736_s22, %s2118_s22   ;;  %s1682_s21 = sphi %s1734_s21, %s2117_s21   ;;  %s1678_s20 = sphi %s1732_s20, %s2116_s20   ;;  %s1674_s19 = sphi %s1730_s19, %s2115_s19   ;;  %s1670_s18 = sphi %s1728_s18, %s2114_s18   ;;  %s1666_s17 = sphi %s1726_s17, %s2113_s17   ;;  %s1662_s16 = sphi %s1724_s16, %s2112_s16   ;;  %s1658_s15 = sphi %s1722_s15, %s2111_s15  }
   0x8   : > { %p25_p0 = scmp.ge.s32.totalorder %s24_s25, 2  ;;  %s27_s26 = sadd.s32 1, %s1686_s22 }
   0x9   : > { %s36_s27 = sadd.s32 1, %s1670_s18  ;;  %p43_p1 = scmp.ne.s32.totalorder %s1670_s18, %s1666_s17 }
   0xa   : > { %s2120_s25 = smov (%p25_p0, %s24_s25), 0  ;;  %s2122_s26 = smov (!%p25_p0, %s27_s26), %s1686_s22 }
   0xb   : > { %s31_s28 = ssub.s32 %s1682_s21, %s2120_s25  ;;  %p44_p2 = scmp.eq.s32.totalorder %s1690_s23, 0 }
   0xc   : > { %p29_p3 = scmp.ge.s32.totalorder %s2122_s26, 2  ;;  %s2103_s29 = ssub.s32 1, %s1682_s21 }
   0xd   : > { %p1785_p4 = por %p44_p2, %p43_p1  ;;  %s60_s5 = ssub.s32 1, %s2120_s25 }
   0xe   : > { %s2124_s26 = smov (%p29_p3, %s2122_s26), 0  ;;  %s61_s6 = ssub.s32 %s2103_s29, %s60_s5 }
   0xf   : > { %s66_s7 = sadd.s32 1, %s1662_s16  ;;  %s32_s8 = ssub.s32 %s1686_s22, %s2124_s26 }
  0x10   : > { %p73_p5 = scmp.ne.s32.totalorder %s1662_s16, %s1658_s15  ;;  %s33_s9 = sor.u32 %s32_s8, %s31_s28 }
  0x11   : > { %s63_s10 = sor.u32 %s61_s6, %s32_s8  ;;  %p34_p6 = scmp.eq.s32.totalorder %s33_s9, 0 }
  0x12   : > { %p64_p7 = scmp.eq.s32.totalorder %s63_s10, 0  ;;  %p1801_p8 = por %p73_p5, %p44_p2 }
  0x13   : > { %p126_p9 = scmp.eq.s32.totalorder %s1363_s24, 3  ;;  %p1366_p12 = scmp.ge.s32.totalorder %s1690_s23, 4 }
  0x14   : > { %s1806_s12 = scalar_select %p34_p6, %s1670_s18, %s36_s27  }
  0x15   : > { %s1809_s13 = scalar_select %p64_p7, %s1662_s16, %s66_s7  }
  0x16   : > { %p1814_p10 = por %p126_p9, %p43_p1  ;;  %p1818_p11 = por %p126_p9, %p73_p5 }
  0x17   : > { %181 = sbr.rel (%p1366_p12) target bundleno = 49 (0x31), region = 20 }
  0x1c   : > { %184 = sbr.rel (!%p1785_p4) target bundleno = 40 (0x28), region = 24  ;;  %s186_s24 = sand.u32 (%p1785_p4), 1, %s1670_s18  }
  0x1d   : > { %s1455_s27 = sshll.u32 (%p1785_p4), %s1682_s21, 3  ;;  %s1367_s5 = sshll.u32 (%p1785_p4), %s186_s24, 4 }
  0x1e   : > { %s191_s6 = sadd.s32 (%p1785_p4), %s1686_s22, %s1455_s27  ;;  %s2109_s0 = sld [smem:[#allocation7_spill]] (%p1785_p4) }
  0x1f   : > { %s1370_s7 = sshll.u32 (%p1785_p4), %s191_s6, 2  ;;  %s188_s29 = scalar_lea.vmem (%p1785_p4), [#allocation3], %s1367_s5 }
  0x24   : > { %s193_s10 = scalar_lea.vmem %s2109_s0, %s1370_s7 }
  0x25   : > { %v210_v0 = vld [vmem:[%s193_s10] sm:$0xf]  ;;  %v212_v1 = vld [vmem:[%s193_s10 + $0x8] sm:$0xf]  ;;  %v214_v2 = vld [vmem:[%s193_s10 + $0x10] sm:$0xf] }
  0x26   : > { %211 = vst [vmem:[%s188_s29] sm:$0xf] %v210_v0  ;;  %213 = vst [vmem:[%s188_s29 + $0x4] sm:$0xf] %v212_v1  ;;  %v216_v3 = vld [vmem:[%s193_s10 + $0x18] sm:$0xf] }
  0x27   : > { %215 = vst [vmem:[%s188_s29 + $0x8] sm:$0xf] %v214_v2  ;;  %217 = vst [vmem:[%s188_s29 + $0xc] sm:$0xf] %v216_v3 }
  0x28 PF: > { %249 = sbr.rel (!%p1801_p8) target bundleno = 49 (0x31), region = 65  ;;  %s251_s30 = sand.u32 (%p1801_p8), 1, %s1662_s16  }
  0x29   : > { %s2110_s24 = ssub.s32 (%p1801_p8), 1, %s1682_s21  ;;  %s1371_s6 = sshll.u32 (%p1801_p8), %s251_s30, 4 }
  0x2a   : > { %s1456_s27 = sshll.u32 (%p1801_p8), %s2110_s24, 3  ;;  %s253_s29 = scalar_lea.vmem (%p1801_p8), [#allocation4], %s1371_s6 }
  0x2b   : > { %s257_s7 = sadd.s32 (%p1801_p8), %s1686_s22, %s1456_s27 }
  0x2c   : > { %s1374_s8 = sshll.u32 (%p1801_p8), %s257_s7, 2 }
  0x2d   : > { %s259_s0 = scalar_lea.vmem %s2099_s1, %s1374_s8 }
  0x2e   : > { %v276_v4 = vld [vmem:[%s259_s0] sm:$0xf]  ;;  %v278_v5 = vld [vmem:[%s259_s0 + $0x8] sm:$0xf]  ;;  %v280_v6 = vld [vmem:[%s259_s0 + $0x10] sm:$0xf] }
  0x2f   : > { %277 = vst [vmem:[%s253_s29] sm:$0xf] %v276_v4  ;;  %279 = vst [vmem:[%s253_s29 + $0x4] sm:$0xf] %v278_v5  ;;  %v282_v7 = vld [vmem:[%s259_s0 + $0x18] sm:$0xf] }
  0x30   : > { %281 = vst [vmem:[%s253_s29 + $0x8] sm:$0xf] %v280_v6  ;;  %283 = vst [vmem:[%s253_s29 + $0xc] sm:$0xf] %v282_v7 }
  0x31 PF: > { %p1375_p13 = scmp.ge.s32.totalorder %s1690_s23, 1  ;;  %p314_p0 = scmp.lt.s32.totalorder %s1690_s23, 5 }
  0x33   : > { %p315_p1 = pnand %p1375_p13, %p314_p0 }
  0x34   : > { %s321_s11 = sand.u32 (!%p315_p1), 1, %s1666_s17   ;;  %s328_s10 = sand.u32 (!%p315_p1), 1, %s1658_s15  }
  0x35   : > { %318 = sbr.rel (%p315_p1) target bundleno = 2982 (0xba6), region = 106  ;;  %s1844_s30 = sshll.u32 (!%p315_p1), %s321_s11, 4 }
  0x36   : > { %s1846_s24 = sshll.u32 (!%p315_p1), %s328_s10, 4  ;;  %s323_s0 = scalar_lea.vmem (!%p315_p1), [#allocation3], %s1844_s30 }
  0x37   : > { %s330_s27 = scalar_lea.vmem (!%p315_p1), [#allocation4], %s1846_s24  ;;  %s1851_s6 = scalar_lea.vmem (!%p315_p1), [#allocation5], %s1844_s30 }
  0x38   : > { %s1854_s7 = scalar_lea.vmem (!%p315_p1), [#allocation6], %s1846_s24  ;;  %p1380_p2 = scmp.ne.s32.totalorder (!%p315_p1), %s1674_s19, 0 }
  0x3a   : > { %370 = sbr.rel (%p1380_p2) target bundleno = 66 (0x42), region = 118 }
  0x3f   : > { %vm371_vm0 = vcmask 261120   ;;  %v1692_v8 = vmov 0.0  }
  0x40   : > { %372 = vst.msk [vmem:[#allocation2] sm:$0xff] %vm371_vm0, %v1692_v8  ;;  %373 = vst.msk [vmem:[#allocation2 + $0x8] sm:$0xff] %vm371_vm0, %v1692_v8 }
  0x41   : > { %374 = vst.msk [vmem:[#allocation2 + $0x10] sm:$0xff] %vm371_vm0, %v1692_v8  ;;  %375 = vst.msk [vmem:[#allocation2 + $0x18] sm:$0xff] %vm371_vm0, %v1692_v8 }
  0x42 PF: > { %s1693_s15 = smov 32   ;;  %v1544_v10 = vld [vmem:[%s2100_s2 + $0x34] ss:$8 sps:$4 sm:$0xff]   ;;  %v1864_v11 = vld [vmem:[%s2100_s2 + $0x30] ss:$8 sps:$4 sm:$0xff]   ;;  %v1694_v12 = vmov 0  }
  0x43   : > { %474 = vmatprep.mubr.bf16.mxu0 %v1694_v12  ;;  %v1870_v13 = vld [vmem:[%s2100_s2 + $0x24] ss:$8 sps:$4 sm:$0xff]   ;;  %657 = vmatprep.mubr.bf16.mxu1 %v1694_v12  ;;  %v1877_v14 = vld [vmem:[%s2100_s2 + $0x20] ss:$8 sps:$4 sm:$0xff]   ;;  %v1884_v15 = vld [vmem:[%s2100_s2 + $0x14] ss:$8 sps:$4 sm:$0xff]  }
  0x44   : > { %450 = vmatprep.subr.bf16.mxu0 %v1544_v10  ;;  %633 = vmatprep.subr.bf16.mxu1 %v1544_v10  ;;  %v1891_v16 = vld [vmem:[%s2100_s2 + $0x10] ss:$8 sps:$4 sm:$0xff]   ;;  %v1898_v17 = vld [vmem:[%s2100_s2 + $0x4] ss:$8 sps:$4 sm:$0xff]   ;;  %v1905_v18 = vld [vmem:[%s2100_s2] ss:$8 sps:$4 sm:$0xff]  }
  0x45   : > { %451 = vmatpush1.bf16.msra.mxu0 %v1864_v11  ;;  %634 = vmatpush1.bf16.msra.mxu1 %v1864_v11  ;;  %vm387_vm1 = vcmask 261120   ;;  %vm438_vm2 = vcmask 523264   ;;  %v1924_v23 = vld [vmem:[%s323_s0] sm:$0xff]   ;;  %v1928_v24 = vld [vmem:[%s330_s27 + $0x8] sm:$0xff]   ;;  %s1695_s9 = smov 64   ;;  %s1696_s5 = smov 96  }
  0x46   : > { %452 = vmatprep.subr.bf16.mxu0 %v1870_v13  ;;  %635 = vmatprep.subr.bf16.mxu1 %v1870_v13  ;;  %v484_v25 = vunpack.c.l.bf16 %v1924_v23  ;;  %v488_v26 = vunpack.c.h.bf16 %v1928_v24  ;;  %v668_v3 = vunpack.c.h.bf16 %v1924_v23  ;;  %v672_v4 = vunpack.c.l.bf16 %v1928_v24  ;;  %s1465_s30 = sshll.u32 (%p1814_p10), %s1674_s19, 3 }
  0x47   : > { %v376_v19 = vld [vmem:[#allocation2] sm:$0xff]  ;;  %v378_v36 = vld [vmem:[#allocation2 + $0x8] sm:$0xff]  ;;  %vm553_vm3 = vcmask 257024   ;;  %s1123_s24 = sadd.s32 (%p1814_p10), %s1678_s20, %s1465_s30 }
  0x48   : > { %v380_v9 = vld [vmem:[#allocation2 + $0x10] sm:$0xff]  ;;  %v382_v34 = vld [vmem:[#allocation2 + $0x18] sm:$0xff] }
  0x49   : > { %384 = vrot.lane.b32.xlu0 %v380_v9, %s1693_s15  ;;  %453 = vmatpush1.bf16.msra.mxu0 %v1877_v14 }
  0x4a   : > { %636 = vmatpush1.bf16.msra.mxu1 %v1877_v14  ;;  %454 = vmatprep.subr.bf16.mxu0 %v1884_v15 }
  0x4b   : > { %637 = vmatprep.subr.bf16.mxu1 %v1884_v15 }
  0x4d   : > { %455 = vmatpush1.bf16.msra.mxu0 %v1891_v16 }
  0x4e   : > { %638 = vmatpush1.bf16.msra.mxu1 %v1891_v16  ;;  %456 = vmatprep.subr.bf16.mxu0 %v1898_v17 }
  0x4f   : > { %639 = vmatprep.subr.bf16.mxu1 %v1898_v17 }
  0x51   : > { %457 = vmatpush1.bf16.msra.mxu0 %v1905_v18 }
  0x52   : > { %640 = vmatpush1.bf16.msra.mxu1 %v1905_v18  ;;  %809 = vmatprep.subr.bf16.mxu0 %v1544_v10 }
  0x53   : > { %985 = vmatprep.subr.bf16.mxu1 %v1544_v10 }
  0xbb   : > { %v385_v20 = vpop.permute.xlu0 %384 }
  0xbc   : > { %v388_v21 = vsel %vm387_vm1, %v376_v19, %v385_v20 }
  0xbd   : > { %v389_v22 = vpack.c.bf16 %v388_v21, %v388_v21 }
  0xbf   : > { %1389 = vmatmul.mubr.msk.bf16.vlgmr.msra.gmra.mxu0 %vm438_vm2, %v389_v22 }
  0xc0   : > { %810 = vmatpush1.bf16.msra.mxu0 %v1864_v11  ;;  %833 = vmatprep.mubr.bf16.mxu0 %v1694_v12 }
  0xc1   : > { %811 = vmatprep.subr.bf16.mxu0 %v1870_v13 }
  0xc4   : > { %812 = vmatpush1.bf16.msra.mxu0 %v1877_v14 }
  0xc5   : > { %813 = vmatprep.subr.bf16.mxu0 %v1884_v15 }
  0xc8   : > { %814 = vmatpush1.bf16.msra.mxu0 %v1891_v16 }
  0xc9   : > { %815 = vmatprep.subr.bf16.mxu0 %v1898_v17 }
  0xcc   : > { %816 = vmatpush1.bf16.msra.mxu0 %v1905_v18 }
 0x17f   : > { %v476_v27 = vpop.f32.mrf.mxu0 }
 0x180   : > { %v485_v28 = vadd.f32 %v484_v25, %v476_v27 }
 0x181   : > { %v478_v29 = vpop.f32.mrf.mxu0 }
 0x182   : > { %1556 = vtanh.f32 %v485_v28  ;;  %v489_v30 = vadd.f32 %v488_v26, %v478_v29  ;;  %v1391_v37 = vmul.f32 -1.442695, %v485_v28 }
 0x183   : > { %v480_v31 = vpop.f32.mrf.mxu0 }
 0x184   : > { %1558 = vtanh.f32 %v489_v30  ;;  %v1392_v38 = vmul.f32 -1.442695, %v489_v30 }
 0x185   : > { %v481_v32 = vpop.f32.mrf.mxu0  ;;  %1560 = vpow2.f32 %v1391_v37 }
 0x186   : > { %1562 = vpow2.f32 %v1392_v38 }
 0x18f   : > { %v1557_v33 = vpop.eup %1556 }
 0x190   : > { %503 = vrot.lane.b32.xlu0 %v1557_v33, %s1693_s15 }
 0x191   : > { %v1559_v35 = vpop.eup %1558 }
 0x192   : > { %531 = vrot.lane.b32.xlu1 %v1559_v35, %s1693_s15  ;;  %v1561_v39 = vpop.eup %1560 }
 0x193   : > { %v1563_v40 = vpop.eup %1562  ;;  %v493_v41 = vadd.f32 1.0, %v1561_v39 }
 0x194   : > { %526 = vrot.lane.b32.xlu0 %v382_v34, %s1693_s15  ;;  %v521_v42 = vadd.f32 1.0, %v1563_v40 }
 0x195   : > { %1564 = vrcp.f32 %v493_v41  ;;  %v1422_v41 = vld [vmem:[%s323_s0 + $0x8] sm:$0xff]   ;;  %s1449_s0 = sshll.u32 (%p1814_p10), %s1123_s24, 2 }
 0x196   : > { %498 = vrot.lane.b32.xlu1 %v378_v36, %s1693_s15  ;;  %1566 = vrcp.f32 %v521_v42  ;;  %v1984_v42 = vld [vmem:[%s330_s27] sm:$0xff]   ;;  %s1125_s29 = scalar_lea.vmem (%p1814_p10), %s2101_s3, %s1449_s0 }
 0x1a2   : > { %v1565_v43 = vpop.eup %1564 }
 0x1a3   : > { %v1567_v46 = vpop.eup %1566 }
 0x202   : > { %v504_v44 = vpop.permute.xlu0 %503 }
 0x203   : > { %v506_v45 = vmul.f32 %v1565_v43, %v504_v44  ;;  %v848_v44 = vunpack.c.h.bf16 %v1984_v42 }
 0x204   : > { %v532_v47 = vpop.permute.xlu1 %531 }
 0x205   : > { %508 = vrot.lane.b32.xlu1 %v506_v45, %s1693_s15  ;;  %v534_v48 = vmul.f32 %v1567_v46, %v532_v47 }
 0x206   : > { %v527_v50 = vpop.permute.xlu0 %526 }
 0x207   : > { %536 = vrot.lane.b32.xlu0 %v534_v48, %s1693_s15  ;;  %v529_v54 = vmul.f32 %v1567_v46, %v527_v50 }
 0x208   : > { %v499_v49 = vpop.permute.xlu1 %498 }
 0x209   : > { %v501_v51 = vmul.f32 %v1565_v43, %v499_v49 }
 0x277   : > { %v509_v52 = vpop.permute.xlu1 %508 }
 0x278   : > { %v1938_v53 = vadd.f32 %v509_v52, %v501_v51 }
 0x279   : > { %v537_v55 = vpop.permute.xlu0 %536 }
 0x27a   : > { %1568 = vtanh.f32 %v1938_v53  ;;  %v539_v56 = vadd.f32 %v537_v55, %v529_v54 }
 0x27c   : > { %1570 = vtanh.f32 %v539_v56 }
 0x287   : > { %v1569_v57 = vpop.eup %1568 }
 0x288   : > { %514 = vrot.lane.b32.xlu1 %v1569_v57, %s1693_s15 }
 0x289   : > { %v1571_v58 = vpop.eup %1570 }
 0x28a   : > { %542 = vrot.lane.b32.xlu0 %v1571_v58, %s1693_s15 }
 0x2fa   : > { %v515_v59 = vpop.permute.xlu1 %514 }
 0x2fb   : > { %v1943_v60 = vmul.f32 %v1565_v43, %v515_v59  ;;  %v844_v43 = vunpack.c.l.bf16 %v1422_v41 }
 0x2fc   : > { %v543_v61 = vpop.permute.xlu0 %542 }
 0x2fd   : > { %565 = vrot.lane.b32.xlu1 %v1943_v60, %s1695_s9  ;;  %v1947_v62 = vmul.f32 %v1567_v46, %v543_v61 }
 0x2ff   : > { %569 = vrot.lane.b32.xlu0 %v1947_v62, %s1696_s5 }
 0x36f   : > { %v566_v63 = vpop.permute.xlu1 %565 }
 0x371   : > { %v570_v0 = vpop.permute.xlu0 %569 }
 0x372   : > { %v572_v1 = vsel %vm387_vm1, %v566_v63, %v570_v0 }
 0x373   : > { %v573_v2 = vpack.c.bf16 %v572_v1, %v572_v1 }
 0x375   : > { %1404 = vmatmul.mubr.msk.bf16.vlgmr.msra.gmra.mxu1 %vm438_vm2, %v573_v2 }
 0x376   : > { %986 = vmatpush1.bf16.msra.mxu1 %v1864_v11  ;;  %1009 = vmatprep.mubr.bf16.mxu1 %v1694_v12 }
 0x377   : > { %987 = vmatprep.subr.bf16.mxu1 %v1870_v13 }
 0x37a   : > { %988 = vmatpush1.bf16.msra.mxu1 %v1877_v14 }
 0x37b   : > { %989 = vmatprep.subr.bf16.mxu1 %v1884_v15 }
 0x37e   : > { %990 = vmatpush1.bf16.msra.mxu1 %v1891_v16 }
 0x37f   : > { %991 = vmatprep.subr.bf16.mxu1 %v1898_v17 }
 0x382   : > { %992 = vmatpush1.bf16.msra.mxu1 %v1905_v18 }
 0x435   : > { %v659_v5 = vpop.f32.mrf.mxu1 }
 0x436   : > { %v669_v6 = vadd.f32 %v668_v3, %v659_v5 }
 0x437   : > { %v661_v7 = vpop.f32.mrf.mxu1 }
 0x438   : > { %1572 = vtanh.f32 %v669_v6  ;;  %v673_v8 = vadd.f32 %v672_v4, %v661_v7  ;;  %v1407_v13 = vmul.f32 -1.442695, %v669_v6 }
 0x439   : > { %v663_v9 = vpop.f32.mrf.mxu1 }
 0x43a   : > { %1574 = vtanh.f32 %v673_v8  ;;  %v1408_v14 = vmul.f32 -1.442695, %v673_v8 }
 0x43b   : > { %v664_v10 = vpop.f32.mrf.mxu1  ;;  %1576 = vpow2.f32 %v1407_v13 }
 0x43c   : > { %1578 = vpow2.f32 %v1408_v14 }
 0x445   : > { %v1573_v11 = vpop.eup %1572 }
 0x446   : > { %683 = vrot.lane.b32.xlu1 %v1573_v11, %s1693_s15 }
 0x447   : > { %v1575_v12 = vpop.eup %1574 }
 0x448   : > { %707 = vrot.lane.b32.xlu0 %v1575_v12, %s1693_s15  ;;  %v1577_v15 = vpop.eup %1576 }
 0x449   : > { %v1579_v16 = vpop.eup %1578  ;;  %v677_v17 = vadd.f32 1.0, %v1577_v15 }
 0x44a   : > { %v701_v18 = vadd.f32 1.0, %v1579_v16 }
 0x44b   : > { %1580 = vrcp.f32 %v677_v17 }
 0x44c   : > { %1582 = vrcp.f32 %v701_v18 }
 0x458   : > { %v1581_v19 = vpop.eup %1580 }
 0x459   : > { %v1583_v22 = vpop.eup %1582  ;;  %v681_v25 = vmul.f32 %v1581_v19, %v1938_v53 }
 0x45a   : > { %v705_v28 = vmul.f32 %v1583_v22, %v539_v56 }
 0x4b8   : > { %v684_v20 = vpop.permute.xlu1 %683 }
 0x4b9   : > { %v686_v21 = vmul.f32 %v1581_v19, %v684_v20  ;;  %v1023_v20 = vunpack.c.l.bf16 %v1984_v42 }
 0x4ba   : > { %v708_v23 = vpop.permute.xlu0 %707 }
 0x4bb   : > { %688 = vrot.lane.b32.xlu1 %v686_v21, %s1693_s15  ;;  %v710_v24 = vmul.f32 %v1583_v22, %v708_v23 }
 0x4bd   : > { %712 = vrot.lane.b32.xlu0 %v710_v24, %s1693_s15 }
 0x52d   : > { %v689_v26 = vpop.permute.xlu1 %688 }
 0x52e   : > { %v691_v27 = vadd.f32 %v689_v26, %v681_v25 }
 0x52f   : > { %v713_v29 = vpop.permute.xlu0 %712 }
 0x530   : > { %1584 = vtanh.f32 %v691_v27  ;;  %v715_v30 = vadd.f32 %v713_v29, %v705_v28 }
 0x532   : > { %1586 = vtanh.f32 %v715_v30 }
 0x53d   : > { %v1585_v31 = vpop.eup %1584 }
 0x53e   : > { %694 = vrot.lane.b32.xlu1 %v1585_v31, %s1693_s15 }
 0x53f   : > { %v1587_v32 = vpop.eup %1586 }
 0x540   : > { %718 = vrot.lane.b32.xlu0 %v1587_v32, %s1693_s15 }
 0x5b0   : > { %v695_v33 = vpop.permute.xlu1 %694 }
 0x5b1   : > { %v1970_v34 = vmul.f32 %v1581_v19, %v695_v33  ;;  %v1020_v19 = vunpack.c.h.bf16 %v1422_v41 }
 0x5b2   : > { %v719_v35 = vpop.permute.xlu0 %718 }
 0x5b3   : > { %741 = vrot.lane.b32.xlu1 %v1970_v34, %s1695_s9  ;;  %v1974_v36 = vmul.f32 %v1583_v22, %v719_v35 }
 0x5b5   : > { %745 = vrot.lane.b32.xlu0 %v1974_v36, %s1696_s5 }
 0x625   : > { %v742_v37 = vpop.permute.xlu1 %741 }
 0x627   : > { %v746_v38 = vpop.permute.xlu0 %745 }
 0x628   : > { %v748_v39 = vsel %vm387_vm1, %v742_v37, %v746_v38 }
 0x629   : > { %v749_v40 = vpack.c.bf16 %v748_v39, %v748_v39 }
 0x62b   : > { %1421 = vmatmul.mubr.msk.bf16.vlgmr.msra.gmra.mxu0 %vm438_vm2, %v749_v40 }
 0x6eb   : > { %v835_v45 = vpop.f32.mrf.mxu0 }
 0x6ec   : > { %v845_v46 = vadd.f32 %v844_v43, %v835_v45 }
 0x6ed   : > { %v837_v47 = vpop.f32.mrf.mxu0 }
 0x6ee   : > { %1588 = vtanh.f32 %v845_v46  ;;  %v849_v48 = vadd.f32 %v848_v44, %v837_v47  ;;  %v1424_v53 = vmul.f32 -1.442695, %v845_v46 }
 0x6ef   : > { %v839_v49 = vpop.f32.mrf.mxu0 }
 0x6f0   : > { %1590 = vtanh.f32 %v849_v48  ;;  %v1425_v54 = vmul.f32 -1.442695, %v849_v48 }
 0x6f1   : > { %v840_v50 = vpop.f32.mrf.mxu0  ;;  %1592 = vpow2.f32 %v1424_v53  ;;  %v1459_v53 = vpack.c.bf16 %v1970_v34, %v1970_v34 }
 0x6f2   : > { %1594 = vpow2.f32 %v1425_v54  ;;  %v1460_v54 = vpack.c.bf16 %v1974_v36, %v1974_v36 }
 0x6fb   : > { %v1589_v51 = vpop.eup %1588 }
 0x6fc   : > { %859 = vrot.lane.b32.xlu1 %v1589_v51, %s1693_s15  ;;  %v1457_v51 = vpack.c.bf16 %v1943_v60, %v1943_v60 }
 0x6fd   : > { %v1591_v52 = vpop.eup %1590 }
 0x6fe   : > { %883 = vrot.lane.b32.xlu0 %v1591_v52, %s1693_s15  ;;  %v1593_v55 = vpop.eup %1592  ;;  %v1458_v52 = vpack.c.bf16 %v1947_v62, %v1947_v62 }
 0x6ff   : > { %v1595_v56 = vpop.eup %1594  ;;  %v853_v57 = vadd.f32 1.0, %v1593_v55 }
 0x700   : > { %v877_v58 = vadd.f32 1.0, %v1595_v56 }
 0x701   : > { %1596 = vrcp.f32 %v853_v57 }
 0x702   : > { %1598 = vrcp.f32 %v877_v58 }
 0x70e   : > { %v1597_v59 = vpop.eup %1596 }
 0x70f   : > { %v1599_v0 = vpop.eup %1598  ;;  %v857_v3 = vmul.f32 %v1597_v59, %v691_v27 }
 0x710   : > { %v881_v6 = vmul.f32 %v1599_v0, %v715_v30 }
 0x76e   : > { %v860_v61 = vpop.permute.xlu1 %859 }
 0x76f   : > { %v862_v63 = vmul.f32 %v1597_v59, %v860_v61 }
 0x770   : > { %v884_v1 = vpop.permute.xlu0 %883 }
 0x771   : > { %864 = vrot.lane.b32.xlu1 %v862_v63, %s1693_s15  ;;  %v886_v2 = vmul.f32 %v1599_v0, %v884_v1 }
 0x773   : > { %888 = vrot.lane.b32.xlu0 %v886_v2, %s1693_s15 }
 0x7e3   : > { %v865_v4 = vpop.permute.xlu1 %864 }
 0x7e4   : > { %v867_v5 = vadd.f32 %v865_v4, %v857_v3 }
 0x7e5   : > { %v889_v7 = vpop.permute.xlu0 %888 }
 0x7e6   : > { %1600 = vtanh.f32 %v867_v5  ;;  %v891_v8 = vadd.f32 %v889_v7, %v881_v6 }
 0x7e8   : > { %1602 = vtanh.f32 %v891_v8 }
 0x7f3   : > { %v1601_v9 = vpop.eup %1600 }
 0x7f4   : > { %870 = vrot.lane.b32.xlu1 %v1601_v9, %s1693_s15 }
 0x7f5   : > { %v1603_v10 = vpop.eup %1602 }
 0x7f6   : > { %894 = vrot.lane.b32.xlu0 %v1603_v10, %s1693_s15 }
 0x866   : > { %v871_v11 = vpop.permute.xlu1 %870 }
 0x867   : > { %v1993_v12 = vmul.f32 %v1597_v59, %v871_v11 }
 0x868   : > { %v895_v13 = vpop.permute.xlu0 %894 }
 0x869   : > { %917 = vrot.lane.b32.xlu1 %v1993_v12, %s1695_s9  ;;  %v897_v14 = vmul.f32 %v1599_v0, %v895_v13  ;;  %v1461_v60 = vpack.c.bf16 %v1993_v12, %v1993_v12 }
 0x86b   : > { %921 = vrot.lane.b32.xlu0 %v897_v14, %s1696_s5  ;;  %v1462_v62 = vpack.c.bf16 %v897_v14, %v897_v14 }
 0x8db   : > { %v918_v15 = vpop.permute.xlu1 %917 }
 0x8dd   : > { %v922_v16 = vpop.permute.xlu0 %921 }
 0x8de   : > { %v924_v17 = vsel %vm387_vm1, %v918_v15, %v922_v16 }
 0x8df   : > { %v925_v18 = vpack.c.bf16 %v924_v17, %v924_v17 }
 0x8e1   : > { %1438 = vmatmul.mubr.msk.bf16.vlgmr.msra.gmra.mxu1 %vm438_vm2, %v925_v18 }
 0x9a1   : > { %v1011_v21 = vpop.f32.mrf.mxu1 }
 0x9a2   : > { %v1021_v22 = vadd.f32 %v1020_v19, %v1011_v21 }
 0x9a3   : > { %v1013_v23 = vpop.f32.mrf.mxu1 }
 0x9a4   : > { %1604 = vtanh.f32 %v1021_v22  ;;  %v1024_v24 = vadd.f32 %v1023_v20, %v1013_v23  ;;  %v1440_v29 = vmul.f32 -1.442695, %v1021_v22 }
 0x9a5   : > { %v1015_v25 = vpop.f32.mrf.mxu1 }
 0x9a6   : > { %1606 = vtanh.f32 %v1024_v24  ;;  %v1441_v30 = vmul.f32 -1.442695, %v1024_v24 }
 0x9a7   : > { %v1016_v26 = vpop.f32.mrf.mxu1  ;;  %1608 = vpow2.f32 %v1440_v29 }
 0x9a8   : > { %1610 = vpow2.f32 %v1441_v30 }
 0x9b1   : > { %v1605_v27 = vpop.eup %1604 }
 0x9b2   : > { %1034 = vrot.lane.b32.xlu1 %v1605_v27, %s1693_s15 }
 0x9b3   : > { %v1607_v28 = vpop.eup %1606 }
 0x9b4   : > { %1058 = vrot.lane.b32.xlu0 %v1607_v28, %s1693_s15  ;;  %v1609_v31 = vpop.eup %1608 }
 0x9b5   : > { %v1611_v32 = vpop.eup %1610  ;;  %v1028_v33 = vadd.f32 1.0, %v1609_v31 }
 0x9b6   : > { %v1052_v35 = vadd.f32 1.0, %v1611_v32 }
 0x9b7   : > { %1612 = vrcp.f32 %v1028_v33 }
 0x9b8   : > { %1614 = vrcp.f32 %v1052_v35 }
 0x9c4   : > { %v1613_v37 = vpop.eup %1612 }
 0x9c5   : > { %v1615_v40 = vpop.eup %1614  ;;  %v1032_v43 = vmul.f32 %v1613_v37, %v867_v5 }
 0x9c6   : > { %v1056_v46 = vmul.f32 %v1615_v40, %v891_v8 }
 0xa24   : > { %v1035_v38 = vpop.permute.xlu1 %1034 }
 0xa25   : > { %v1037_v39 = vmul.f32 %v1613_v37, %v1035_v38 }
 0xa26   : > { %v1059_v41 = vpop.permute.xlu0 %1058 }
 0xa27   : > { %1039 = vrot.lane.b32.xlu1 %v1037_v39, %s1693_s15  ;;  %v1061_v42 = vmul.f32 %v1615_v40, %v1059_v41 }
 0xa29   : > { %1063 = vrot.lane.b32.xlu0 %v1061_v42, %s1693_s15 }
 0xa99   : > { %v1040_v44 = vpop.permute.xlu1 %1039 }
 0xa9a   : > { %v1042_v45 = vadd.f32 %v1040_v44, %v1032_v43 }
 0xa9b   : > { %v1064_v47 = vpop.permute.xlu0 %1063 }
 0xa9c   : > { %1616 = vtanh.f32 %v1042_v45  ;;  %v1066_v48 = vadd.f32 %v1064_v47, %v1056_v46 }
 0xa9e   : > { %1618 = vtanh.f32 %v1066_v48 }
 0xaa9   : > { %v1617_v49 = vpop.eup %1616 }
 0xaaa   : > { %1045 = vrot.lane.b32.xlu1 %v1617_v49, %s1693_s15 }
 0xaab   : > { %v1619_v50 = vpop.eup %1618 }
 0xaac   : > { %1069 = vrot.lane.b32.xlu0 %v1619_v50, %s1693_s15 }
 0xaae   : > { %550 = vrot.lane.b32.xlu1 %v1457_v51, %s1695_s9 }
 0xab0   : > { %559 = vrot.lane.b32.xlu0 %v1458_v52, %s1695_s9 }
 0xab2   : > { %726 = vrot.lane.b32.xlu1 %v1459_v53, %s1695_s9 }
 0xab4   : > { %735 = vrot.lane.b32.xlu0 %v1460_v54, %s1695_s9 }
 0xab6   : > { %902 = vrot.lane.b32.xlu1 %v1461_v60, %s1695_s9 }
 0xab8   : > { %911 = vrot.lane.b32.xlu0 %v1462_v62, %s1695_s9 }
 0xabc   : > { %1096 = vrot.lane.b32.xlu0 %v1042_v45, %s1696_s5 }
 0xb1c   : > { %v1046_v34 = vpop.permute.xlu1 %1045 }
 0xb1d   : > { %v1048_v55 = vmul.f32 %v1613_v37, %v1046_v34 }
 0xb1e   : > { %v1070_v56 = vpop.permute.xlu0 %1069 }
 0xb1f   : > { %1091 = vrot.lane.b32.xlu1 %v1048_v55, %s1695_s9  ;;  %v1072_v36 = vmul.f32 %v1615_v40, %v1070_v56  ;;  %v1463_v58 = vpack.c.bf16 %v1048_v55, %v1048_v55 }
 0xb20   : > { %v551_v57 = vpop.permute.xlu1 %550 }
 0xb21   : > { %554 = vst.msk [vmem:[%s1851_s6] sm:$0xf] %vm553_vm3, %v551_v57  ;;  %v1464_v59 = vpack.c.bf16 %v1072_v36, %v1072_v36 }
 0xb22   : > { %v560_v61 = vpop.permute.xlu0 %559 }
 0xb23   : > { %1077 = vrot.lane.b32.xlu1 %v1463_v58, %s1695_s9  ;;  %1395 = vst.msk [vmem:[%s1854_s7 + $0xc] sm:$0xf] %vm553_vm3, %v560_v61  ;;  %1086 = vrot.lane.b32.xlu0 %v1464_v59, %s1695_s9 }
 0xb24   : > { %v727_v63 = vpop.permute.xlu1 %726 }
 0xb25   : > { %1410 = vst.msk [vmem:[%s1851_s6 + $0x4] sm:$0xf] %vm553_vm3, %v727_v63 }
 0xb26   : > { %v736_v0 = vpop.permute.xlu0 %735 }
 0xb27   : > { %1101 = vrot.lane.b32.xlu1 %v1072_v36, %s1695_s9  ;;  %1412 = vst.msk [vmem:[%s1854_s7 + $0x8] sm:$0xf] %vm553_vm3, %v736_v0  ;;  %1106 = vrot.lane.b32.xlu0 %v1066_v48, %s1696_s5 }
 0xb28   : > { %v903_v1 = vpop.permute.xlu1 %902  ;;  %v1142_v9 = vld [vmem:[%s1851_s6] sm:$0xf] (%p1814_p10) }
 0xb29   : > { %1427 = vst.msk [vmem:[%s1851_s6 + $0x8] sm:$0xf] %vm553_vm3, %v903_v1  ;;  %1143 = vst [vmem:[%s1125_s29] sm:$0xf] (%p1814_p10), %v1142_v9 }
 0xb2a   : > { %v912_v2 = vpop.permute.xlu0 %911 }
 0xb2b   : > { %1429 = vst.msk [vmem:[%s1854_s7 + $0x4] sm:$0xf] %vm553_vm3, %v912_v2 }
 0xb2c   : > { %v1144_v10 = vld [vmem:[%s1851_s6 + $0x4] sm:$0xf] (%p1814_p10) }
 0xb2d   : > { %1145 = vst [vmem:[%s1125_s29 + $0x8] sm:$0xf] (%p1814_p10), %v1144_v10 }
 0xb2e   : > { %v1097_v3 = vpop.permute.xlu0 %1096 }
 0xb2f   : > { %1099 = vst.msk [vmem:[#allocation2 + $0x8] sm:$0xff] %vm387_vm1, %v1097_v3 }
 0xb30   : > { %v1146_v11 = vld [vmem:[%s1851_s6 + $0x8] sm:$0xf] (%p1814_p10) }
 0xb31   : > { %1147 = vst [vmem:[%s1125_s29 + $0x10] sm:$0xf] (%p1814_p10), %v1146_v11 }
 0xb91   : > { %v1092_v4 = vpop.permute.xlu1 %1091 }
 0xb92   : > { %1094 = vst.msk [vmem:[#allocation2] sm:$0xff] %vm387_vm1, %v1092_v4 }
 0xb95   : > { %v1078_v5 = vpop.permute.xlu1 %1077  ;;  %v1087_v6 = vpop.permute.xlu0 %1086 }
 0xb96   : > { %1443 = vst.msk [vmem:[%s1851_s6 + $0xc] sm:$0xf] %vm553_vm3, %v1078_v5  ;;  %1089 = vst.msk [vmem:[%s1854_s7] sm:$0xf] %vm553_vm3, %v1087_v6  ;;  %1120 = sbr.rel (!%p1814_p10) target bundleno = 2975 (0xb9f), region = 122 }
 0xb99   : > { %v1102_v7 = vpop.permute.xlu1 %1101  ;;  %v1107_v8 = vpop.permute.xlu0 %1106 }
 0xb9a   : > { %1104 = vst.msk [vmem:[#allocation2 + $0x10] sm:$0xff] %vm387_vm1, %v1102_v7  ;;  %1109 = vst.msk [vmem:[#allocation2 + $0x18] sm:$0xff] %vm387_vm1, %v1107_v8 }
 0xb9d   : > { %v1148_v12 = vld [vmem:[%s1851_s6 + $0xc] sm:$0xf] }
 0xb9e   : > { %1149 = vst [vmem:[%s1125_s29 + $0x18] sm:$0xf] %v1148_v12 }
 0xb9f PF: > { %1181 = sbr.rel (!%p1818_p11) target bundleno = 2982 (0xba6), region = 163  ;;  %s1182_s14 = ssub.s32 (%p1818_p11), 1, %s1674_s19  ;;  %v1206_v14 = vld [vmem:[%s1854_s7 + $0x4] sm:$0xf] (%p1818_p11)  ;;  %v1208_v15 = vld [vmem:[%s1854_s7 + $0x8] sm:$0xf] (%p1818_p11) }
 0xba0   : > { %s1466_s6 = sshll.u32 (%p1818_p11), %s1182_s14, 3  ;;  %v1210_v16 = vld [vmem:[%s1854_s7 + $0xc] sm:$0xf] (%p1818_p11) }
 0xba1   : > { %v1204_v13 = vld [vmem:[%s1854_s7] sm:$0xf] (%p1818_p11)  ;;  %s1185_s11 = sadd.s32 (%p1818_p11), %s1678_s20, %s1466_s6 }
 0xba2   : > { %s1452_s10 = sshll.u32 (%p1818_p11), %s1185_s11, 2 }
 0xba3   : > { %s1187_s9 = scalar_lea.vmem (%p1818_p11), %s2102_s4, %s1452_s10 }
 0xba4   : > { %1205 = vst [vmem:[%s1187_s9] sm:$0xf] %v1204_v13  ;;  %1207 = vst [vmem:[%s1187_s9 + $0x8] sm:$0xf] %v1206_v14 }
 0xba5   : > { %1209 = vst [vmem:[%s1187_s9 + $0x10] sm:$0xf] %v1208_v15  ;;  %1211 = vst [vmem:[%s1187_s9 + $0x18] sm:$0xf] %v1210_v16 }
 0xba6 PF: > { %s15_s23 = sadd.s32 1, %s1690_s23   ;;  %s2111_s15 = smov %s1662_s16 }
 0xba7   : > { %p12_p3 = scmp.ge.s32.totalorder %s15_s23, 6   ;;  %s2112_s16 = smov %s1809_s13 }
 0xba8   : > { %s2113_s17 = smov %s1670_s18  ;;  %s2114_s18 = smov %s1806_s12 }
 0xba9   : > { %s2115_s19 = smov %s1682_s21  ;;  %s2116_s20 = smov %s1686_s22 }
 0xbaa   : > { %s2117_s21 = smov %s2120_s25  ;;  %s2118_s22 = smov %s2124_s26 }
 0xbab   :  { %14 = sbr.rel (!%p12_p3) target bundleno = 7 (0x7), region = 270 }

</bundles_post_ra>
